<compile_context>
chip_gen: v7x
topology: tpu7x:2x2x1
jax: 0.10.0
libtpu: 0.0.40
codegen_flags: <defaults>
</compile_context>

<pallas_src>
import numpy as np
import jax
import jax.numpy as jnp
from jax.experimental import pallas as pl
from jax.experimental.pallas import tpu as pltpu

LANE = 128


def _round_up(x, m):
    return (x + m - 1) // m * m


def critic_kernel(xo_ref, xa_ref, w1o_ref, w1a_ref, b1_ref,
                  w2_ref, b2_ref, w3_ref, b3_ref, w4_ref, b4_ref, o_ref):
    """Fused 4-layer MLP for one batch tile.

      h1 = relu(x_obs @ W1o + x_act @ W1a + b1)
      h2 = relu(h1 @ W2 + b2); h3 = relu(h2 @ W3 + b3); out = h3 @ W4 + b4

    MXU operand dtype = weight dtype (bf16 or f32); accumulation + bias/ReLU
    are always f32.
    """
    cdt = w1o_ref.dtype  # MXU operand dtype (bf16 or f32)

    h1 = (jnp.dot(xo_ref[...], w1o_ref[...], preferred_element_type=jnp.float32)
          + jnp.dot(xa_ref[...], w1a_ref[...], preferred_element_type=jnp.float32)
          + b1_ref[...])
    h1 = jnp.maximum(h1, 0.0)

    h2 = jnp.maximum(
        jnp.dot(h1.astype(cdt), w2_ref[...], preferred_element_type=jnp.float32)
        + b2_ref[...], 0.0)

    h3 = jnp.maximum(
        jnp.dot(h2.astype(cdt), w3_ref[...], preferred_element_type=jnp.float32)
        + b3_ref[...], 0.0)

    o_ref[...] = (
        jnp.dot(h3.astype(cdt), w4_ref[...], preferred_element_type=jnp.float32)
        + b4_ref[...])


def critic_forward(observation, action, params, *, tile_b=256, use_bf16=True):
    """MADDPG critic forward: fused concat + 4-layer MLP via one pallas_call."""
    w1, b1, w2, b2, w3, b3, w4, b4 = params  # (in, out) layout, float32
    obs_dim = observation.shape[1]
    act_dim = action.shape[1]
    out_size = w4.shape[1]

    # Lane-dense padded widths (multiples of 128).
    f1p = _round_up(w1.shape[1], LANE)
    f2p = _round_up(w2.shape[1], LANE)
    f3p = _round_up(w3.shape[1], LANE)
    outp = _round_up(out_size, LANE)

    def pad2(a, rows, cols):
        return jnp.pad(a, ((0, rows - a.shape[0]), (0, cols - a.shape[1])))

    # Split W1 for the fused concat; zero-pad all weights/biases lane-dense.
    w1o = pad2(w1[:obs_dim, :], obs_dim, f1p)
    w1a = pad2(w1[obs_dim:, :], act_dim, f1p)
    b1p = pad2(b1, 1, f1p)
    w2p = pad2(w2, f1p, f2p)
    b2p = pad2(b2, 1, f2p)
    w3p = pad2(w3, f2p, f3p)
    b3p = pad2(b3, 1, f3p)
    w4p = pad2(w4, f3p, outp)
    b4p = pad2(b4, 1, outp)

    cdt = jnp.bfloat16 if use_bf16 else jnp.float32
    xo = observation.astype(cdt)
    xa = action.astype(cdt)
    w1o, w1a, w2p, w3p, w4p = (a.astype(cdt) for a in (w1o, w1a, w2p, w3p, w4p))
    # Biases stay f32 (added after f32 accumulation).

    # Batch tiling: keep tile_b a multiple of 8 (f32 sublane), pad B if needed.
    B = observation.shape[0]
    tile_b = _round_up(max(8, min(tile_b, B)), 8)
    Bp = _round_up(B, tile_b)
    if Bp != B:
        xo = jnp.pad(xo, ((0, Bp - B), (0, 0)))
        xa = jnp.pad(xa, ((0, Bp - B), (0, 0)))

    grid = (Bp // tile_b,)

    def const(shape):
        # Parameter blocks: whole array, same block for every grid point.
        # (Single-buffering via pipeline_mode=pl.Buffered(1) would save a few
        #  tens of KiB of VMEM here; skipped — negligible at these sizes.)
        return pl.BlockSpec(shape, lambda i: (0,) * len(shape))

    out = pl.pallas_call(
        critic_kernel,
        out_shape=jax.ShapeDtypeStruct((Bp, outp), jnp.float32),
        grid_spec=pltpu.PrefetchScalarGridSpec(
            num_scalar_prefetch=0,
            grid=grid,
            in_specs=[
                pl.BlockSpec((tile_b, obs_dim), lambda i: (i, 0)),  # obs tile
                pl.BlockSpec((tile_b, act_dim), lambda i: (i, 0)),  # act tile
                const((obs_dim, f1p)), const((act_dim, f1p)), const((1, f1p)),
                const((f1p, f2p)), const((1, f2p)),
                const((f2p, f3p)), const((1, f3p)),
                const((f3p, outp)), const((1, outp)),
            ],
            out_specs=pl.BlockSpec((tile_b, outp), lambda i: (i, 0)),
        ),
        compiler_params=pltpu.CompilerParams(
            dimension_semantics=("parallel",)),
    )(xo, xa, w1o, w1a, b1p, w2p, b2p, w3p, b3p, w4p, b4p)

    # Strip batch padding and the lane padding of the output column.
    return out[:B, :out_size]


def init_params(key, input_size, output_size,
                fc1_size=128, fc2_size=64, fc3_size=32):
    """Deterministic synthetic init mirroring the PyTorch module's __init__."""
    ks = jax.random.split(key, 8)
    stdv1 = 1.0 / np.sqrt(fc1_size)
    stdv2 = 1.0 / np.sqrt(fc2_size)
    stdv3 = 1.0 / np.sqrt(fc3_size)

    def u(k, shape, lo, hi):
        return jax.random.uniform(k, shape, jnp.float32, lo, hi)

    # Weights stored as (in, out) = PyTorch weight.T
    w1 = u(ks[0], (input_size, fc1_size), -stdv1, stdv1)
    w2 = u(ks[1], (fc1_size, fc2_size), -stdv2, stdv2)
    w3 = u(ks[2], (fc2_size, fc3_size), -stdv3, stdv3)
    w4 = u(ks[3], (fc3_size, output_size), -0.001, 0.001)
    # Biases: PyTorch default Linear bias init is U(-1/sqrt(fan_in), 1/sqrt(fan_in))
    b1 = u(ks[4], (1, fc1_size), -1.0 / np.sqrt(input_size), 1.0 / np.sqrt(input_size))
    b2 = u(ks[5], (1, fc2_size), -1.0 / np.sqrt(fc1_size), 1.0 / np.sqrt(fc1_size))
    b3 = u(ks[6], (1, fc3_size), -1.0 / np.sqrt(fc2_size), 1.0 / np.sqrt(fc2_size))
    b4 = u(ks[7], (1, output_size), -1.0 / np.sqrt(fc3_size), 1.0 / np.sqrt(fc3_size))
    return (w1, b1, w2, b2, w3, b3, w4, b4)


def reference_forward(observation, action, params):
    """Pure-JAX f32 reference (matches the PyTorch module) for correctness."""
    x = jnp.concatenate([observation, action], axis=1)
    w1, b1, w2, b2, w3, b3, w4, b4 = params
    x = jnp.maximum(x @ w1 + b1, 0.0)
    x = jnp.maximum(x @ w2 + b2, 0.0)
    x = jnp.maximum(x @ w3 + b3, 0.0)
    return x @ w4 + b4


if __name__ == "__main__":
    key = jax.random.PRNGKey(0)
    k_obs, k_act, k_par = jax.random.split(key, 3)

    batch = 512          # keeps >= 2 parallel grid steps at tile_b=256 (v7x)
    obs_dim = 12
    act_dim = 4
    input_size = obs_dim + act_dim
    output_size = 1

    observation = jax.random.normal(k_obs, (batch, obs_dim), jnp.float32)
    action = jax.random.normal(k_act, (batch, act_dim), jnp.float32)
    params = init_params(k_par, input_size, output_size)

    out = critic_forward(observation, action, params, tile_b=256, use_bf16=True)
    out = jax.block_until_ready(out)

    ref = reference_forward(observation, action, params)
    # bf16 MXU operands -> allow small deviation vs the f32 reference.
    np.testing.assert_allclose(np.asarray(out), np.asarray(ref),
                               rtol=2e-2, atol=2e-2)

    # Also check the exact-f32 path matches tightly.
    out_f32 = jax.block_until_ready(
        critic_forward(observation, action, params, tile_b=256, use_bf16=False))
    np.testing.assert_allclose(np.asarray(out_f32), np.asarray(ref),
                               rtol=1e-5, atol=1e-5)

    print("KERNEL_OK")
</pallas_src>

<mosaic_0001>
module attributes {stable_mosaic.version = 11 : i64} {
  func.func @critic_kernel(%arg0: i32, %arg1: memref<256x12xbf16, #tpu.memory_space<vmem>>, %arg2: memref<256x4xbf16, #tpu.memory_space<vmem>>, %arg3: memref<12x128xbf16, #tpu.memory_space<vmem>>, %arg4: memref<4x128xbf16, #tpu.memory_space<vmem>>, %arg5: memref<1x128xf32, #tpu.memory_space<vmem>>, %arg6: memref<128x128xbf16, #tpu.memory_space<vmem>>, %arg7: memref<1x128xf32, #tpu.memory_space<vmem>>, %arg8: memref<128x128xbf16, #tpu.memory_space<vmem>>, %arg9: memref<1x128xf32, #tpu.memory_space<vmem>>, %arg10: memref<128x128xbf16, #tpu.memory_space<vmem>>, %arg11: memref<1x128xf32, #tpu.memory_space<vmem>>, %arg12: memref<256x128xf32, #tpu.memory_space<vmem>>) attributes {dimension_semantics = [#tpu.dimension_semantics<parallel>], iteration_bounds = array<i64: 2>, scalar_prefetch = 0 : i64, scratch_operands = 0 : i64, tpu.core_type = #tpu.core_type<tc>, window_params = [{transform_indices = @transform_0, window_bounds = array<i64: 256, 12>}, {transform_indices = @transform_1, window_bounds = array<i64: 256, 4>}, {pipeline_mode = #tpu.pipeline_mode<synchronous>, transform_indices = @transform_2, window_bounds = array<i64: 12, 128>}, {pipeline_mode = #tpu.pipeline_mode<synchronous>, transform_indices = @transform_3, window_bounds = array<i64: 4, 128>}, {pipeline_mode = #tpu.pipeline_mode<synchronous>, transform_indices = @transform_4, window_bounds = array<i64: 1, 128>}, {pipeline_mode = #tpu.pipeline_mode<synchronous>, transform_indices = @transform_5, window_bounds = array<i64: 128, 128>}, {pipeline_mode = #tpu.pipeline_mode<synchronous>, transform_indices = @transform_6, window_bounds = array<i64: 1, 128>}, {pipeline_mode = #tpu.pipeline_mode<synchronous>, transform_indices = @transform_7, window_bounds = array<i64: 128, 128>}, {pipeline_mode = #tpu.pipeline_mode<synchronous>, transform_indices = @transform_8, window_bounds = array<i64: 1, 128>}, {pipeline_mode = #tpu.pipeline_mode<synchronous>, transform_indices = @transform_9, window_bounds = array<i64: 128, 128>}, {pipeline_mode = #tpu.pipeline_mode<synchronous>, transform_indices = @transform_10, window_bounds = array<i64: 1, 128>}, {transform_indices = @transform_11, window_bounds = array<i64: 256, 128>}]} {
    %c0 = arith.constant 0 : index
    %c0_0 = arith.constant 0 : index
    %0 = vector.load %arg1[%c0, %c0_0] : memref<256x12xbf16, #tpu.memory_space<vmem>>, vector<256x12xbf16>
    %c0_1 = arith.constant 0 : index
    %c0_2 = arith.constant 0 : index
    %1 = vector.load %arg3[%c0_1, %c0_2] : memref<12x128xbf16, #tpu.memory_space<vmem>>, vector<12x128xbf16>
    %cst = arith.constant dense<0.000000e+00> : vector<256x128xf32>
    %2 = tpu.matmul %0, %1, %cst {dimension_numbers = #tpu.dot_dimension_numbers<[1], [0], [0], [1], [0, 0, 1, 1], [], []>} : vector<256x12xbf16>, vector<12x128xbf16>, vector<256x128xf32> -> vector<256x128xf32>
    %c0_3 = arith.constant 0 : index
    %c0_4 = arith.constant 0 : index
    %3 = vector.load %arg2[%c0_3, %c0_4] : memref<256x4xbf16, #tpu.memory_space<vmem>>, vector<256x4xbf16>
    %c0_5 = arith.constant 0 : index
    %c0_6 = arith.constant 0 : index
    %4 = vector.load %arg4[%c0_5, %c0_6] : memref<4x128xbf16, #tpu.memory_space<vmem>>, vector<4x128xbf16>
    %cst_7 = arith.constant dense<0.000000e+00> : vector<256x128xf32>
    %5 = tpu.matmul %3, %4, %cst_7 {dimension_numbers = #tpu.dot_dimension_numbers<[1], [0], [0], [1], [0, 0, 1, 1], [], []>} : vector<256x4xbf16>, vector<4x128xbf16>, vector<256x128xf32> -> vector<256x128xf32>
    %6 = arith.addf %2, %5 : vector<256x128xf32>
    %c0_8 = arith.constant 0 : index
    %c0_9 = arith.constant 0 : index
    %7 = vector.load %arg5[%c0_8, %c0_9] : memref<1x128xf32, #tpu.memory_space<vmem>>, vector<1x128xf32>
    %8 = vector.broadcast %7 : vector<1x128xf32> to vector<256x128xf32>
    %9 = arith.addf %6, %8 : vector<256x128xf32>
    %cst_10 = arith.constant 0.000000e+00 : f32
    %10 = vector.broadcast %cst_10 : f32 to vector<256x128xf32>
    %11 = arith.maximumf %9, %10 : vector<256x128xf32>
    %12 = arith.truncf %11 : vector<256x128xf32> to vector<256x128xbf16>
    %c0_11 = arith.constant 0 : index
    %c0_12 = arith.constant 0 : index
    %13 = vector.load %arg6[%c0_11, %c0_12] : memref<128x128xbf16, #tpu.memory_space<vmem>>, vector<128x128xbf16>
    %cst_13 = arith.constant dense<0.000000e+00> : vector<256x128xf32>
    %14 = tpu.matmul %12, %13, %cst_13 {dimension_numbers = #tpu.dot_dimension_numbers<[1], [0], [0], [1], [0, 0, 1, 1], [], []>} : vector<256x128xbf16>, vector<128x128xbf16>, vector<256x128xf32> -> vector<256x128xf32>
    %c0_14 = arith.constant 0 : index
    %c0_15 = arith.constant 0 : index
    %15 = vector.load %arg7[%c0_14, %c0_15] : memref<1x128xf32, #tpu.memory_space<vmem>>, vector<1x128xf32>
    %16 = vector.broadcast %15 : vector<1x128xf32> to vector<256x128xf32>
    %17 = arith.addf %14, %16 : vector<256x128xf32>
    %cst_16 = arith.constant 0.000000e+00 : f32
    %18 = vector.broadcast %cst_16 : f32 to vector<256x128xf32>
    %19 = arith.maximumf %17, %18 : vector<256x128xf32>
    %20 = arith.truncf %19 : vector<256x128xf32> to vector<256x128xbf16>
    %c0_17 = arith.constant 0 : index
    %c0_18 = arith.constant 0 : index
    %21 = vector.load %arg8[%c0_17, %c0_18] : memref<128x128xbf16, #tpu.memory_space<vmem>>, vector<128x128xbf16>
    %cst_19 = arith.constant dense<0.000000e+00> : vector<256x128xf32>
    %22 = tpu.matmul %20, %21, %cst_19 {dimension_numbers = #tpu.dot_dimension_numbers<[1], [0], [0], [1], [0, 0, 1, 1], [], []>} : vector<256x128xbf16>, vector<128x128xbf16>, vector<256x128xf32> -> vector<256x128xf32>
    %c0_20 = arith.constant 0 : index
    %c0_21 = arith.constant 0 : index
    %23 = vector.load %arg9[%c0_20, %c0_21] : memref<1x128xf32, #tpu.memory_space<vmem>>, vector<1x128xf32>
    %24 = vector.broadcast %23 : vector<1x128xf32> to vector<256x128xf32>
    %25 = arith.addf %22, %24 : vector<256x128xf32>
    %cst_22 = arith.constant 0.000000e+00 : f32
    %26 = vector.broadcast %cst_22 : f32 to vector<256x128xf32>
    %27 = arith.maximumf %25, %26 : vector<256x128xf32>
    %28 = arith.truncf %27 : vector<256x128xf32> to vector<256x128xbf16>
    %c0_23 = arith.constant 0 : index
    %c0_24 = arith.constant 0 : index
    %29 = vector.load %arg10[%c0_23, %c0_24] : memref<128x128xbf16, #tpu.memory_space<vmem>>, vector<128x128xbf16>
    %cst_25 = arith.constant dense<0.000000e+00> : vector<256x128xf32>
    %30 = tpu.matmul %28, %29, %cst_25 {dimension_numbers = #tpu.dot_dimension_numbers<[1], [0], [0], [1], [0, 0, 1, 1], [], []>} : vector<256x128xbf16>, vector<128x128xbf16>, vector<256x128xf32> -> vector<256x128xf32>
    %c0_26 = arith.constant 0 : index
    %c0_27 = arith.constant 0 : index
    %31 = vector.load %arg11[%c0_26, %c0_27] : memref<1x128xf32, #tpu.memory_space<vmem>>, vector<1x128xf32>
    %32 = vector.broadcast %31 : vector<1x128xf32> to vector<256x128xf32>
    %33 = arith.addf %30, %32 : vector<256x128xf32>
    %c0_28 = arith.constant 0 : index
    %c0_29 = arith.constant 0 : index
    %34 = vector.load %arg12[%c0_28, %c0_29] : memref<256x128xf32, #tpu.memory_space<vmem>>, vector<256x128xf32>
    tpu.vector_store %arg12[%c0_28, %c0_29], %33 {strides = array<i32>} : memref<256x128xf32, #tpu.memory_space<vmem>>, vector<256x128xf32>,
    return
  }
  func.func @transform_0(%arg0: i32) -> (i32, i32) {
    %c0_i32 = arith.constant 0 : i32
    %c0_i32_0 = arith.constant 0 : i32
    return %arg0, %c0_i32 : i32, i32
  }
  func.func @transform_1(%arg0: i32) -> (i32, i32) {
    %c0_i32 = arith.constant 0 : i32
    %c0_i32_0 = arith.constant 0 : i32
    return %arg0, %c0_i32 : i32, i32
  }
  func.func @transform_2(%arg0: i32) -> (i32, i32) {
    %c0_i32 = arith.constant 0 : i32
    %c0_i32_0 = arith.constant 0 : i32
    %c0_i32_1 = arith.constant 0 : i32
    return %c0_i32, %c0_i32_0 : i32, i32
  }
  func.func @transform_3(%arg0: i32) -> (i32, i32) {
    %c0_i32 = arith.constant 0 : i32
    %c0_i32_0 = arith.constant 0 : i32
    %c0_i32_1 = arith.constant 0 : i32
    return %c0_i32, %c0_i32_0 : i32, i32
  }
  func.func @transform_4(%arg0: i32) -> (i32, i32) {
    %c0_i32 = arith.constant 0 : i32
    %c0_i32_0 = arith.constant 0 : i32
    %c0_i32_1 = arith.constant 0 : i32
    return %c0_i32, %c0_i32_0 : i32, i32
  }
  func.func @transform_5(%arg0: i32) -> (i32, i32) {
    %c0_i32 = arith.constant 0 : i32
    %c0_i32_0 = arith.constant 0 : i32
    %c0_i32_1 = arith.constant 0 : i32
    return %c0_i32, %c0_i32_0 : i32, i32
  }
  func.func @transform_6(%arg0: i32) -> (i32, i32) {
    %c0_i32 = arith.constant 0 : i32
    %c0_i32_0 = arith.constant 0 : i32
    %c0_i32_1 = arith.constant 0 : i32
    return %c0_i32, %c0_i32_0 : i32, i32
  }
  func.func @transform_7(%arg0: i32) -> (i32, i32) {
    %c0_i32 = arith.constant 0 : i32
    %c0_i32_0 = arith.constant 0 : i32
    %c0_i32_1 = arith.constant 0 : i32
    return %c0_i32, %c0_i32_0 : i32, i32
  }
  func.func @transform_8(%arg0: i32) -> (i32, i32) {
    %c0_i32 = arith.constant 0 : i32
    %c0_i32_0 = arith.constant 0 : i32
    %c0_i32_1 = arith.constant 0 : i32
    return %c0_i32, %c0_i32_0 : i32, i32
  }
  func.func @transform_9(%arg0: i32) -> (i32, i32) {
    %c0_i32 = arith.constant 0 : i32
    %c0_i32_0 = arith.constant 0 : i32
    %c0_i32_1 = arith.constant 0 : i32
    return %c0_i32, %c0_i32_0 : i32, i32
  }
  func.func @transform_10(%arg0: i32) -> (i32, i32) {
    %c0_i32 = arith.constant 0 : i32
    %c0_i32_0 = arith.constant 0 : i32
    %c0_i32_1 = arith.constant 0 : i32
    return %c0_i32, %c0_i32_0 : i32, i32
  }
  func.func @transform_11(%arg0: i32) -> (i32, i32) {
    %c0_i32 = arith.constant 0 : i32
    %c0_i32_0 = arith.constant 0 : i32
    return %arg0, %c0_i32 : i32, i32
  }
}

</mosaic_0001>

<bundles_post_ra>
// kernel: tpu_custom_call.1
= control target key start
LH: loop header
LB: loop body
LE: loop exit
PB: predicated region body
PF: predicated region fallthrough
CT: control target
= control target key end

     0   :  { %16 = vsyncpa [#allocation3], 0  ;;  %s3246_s0 = inlined_call_operand.vmem [shape: bf16[512,12], index: 0, kind: input, shape index: {}]   ;;  %s3247_s1 = inlined_call_operand.vmem [shape: bf16[512,4], index: 1, kind: input, shape index: {}]   ;;  %s3248_s2 = inlined_call_operand.vmem [shape: bf16[12,128], index: 2, kind: input, shape index: {}]   ;;  %s3249_s3 = inlined_call_operand.vmem [shape: bf16[4,128], index: 3, kind: input, shape index: {}]   ;;  %s3250_s4 = inlined_call_operand.vmem [shape: f32[1,128], index: 4, kind: input, shape index: {}]   ;;  %s3251_s5 = inlined_call_operand.vmem [shape: bf16[128,128], index: 5, kind: input, shape index: {}]   ;;  %s3252_s6 = inlined_call_operand.vmem [shape: f32[1,128], index: 6, kind: input, shape index: {}]   ;;  %s3253_s7 = inlined_call_operand.vmem [shape: bf16[128,128], index: 7, kind: input, shape index: {}]   ;;  %s3254_s8 = inlined_call_operand.vmem [shape: f32[1,128], index: 8, kind: input, shape index: {}]   ;;  %s3255_s9 = inlined_call_operand.vmem [shape: bf16[128,128], index: 9, kind: input, shape index: {}]   ;;  %s3256_s10 = inlined_call_operand.vmem [shape: f32[1,128], index: 10, kind: input, shape index: {}]   ;;  %s3257_s11 = inlined_call_operand.hbm [shape: f32[512,128], index: 11, kind: output, shape index: {}]  }
   0x1   :  { %18 = vsyncpa [#allocation3 + $0x1], 0  ;;  %s2758_s17 = smov 0   ;;  %s2760_s18 = smov 0  }
   0x2   :  { %s2762_s19 = smov 0   ;;  %s2764_s20 = smov 0  }
   0x3 LB: > { %s2779_s21 = sadd.s32 4294967295, %s2693_s20   ;;  %s2070_s22 = sadd.s32 4294967294, %s2693_s20   ;;  %s2693_s20 = sphi %s2764_s20, %s3263_s20   ;;  %s2689_s19 = sphi %s2762_s19, %s3262_s19   ;;  %s2685_s18 = sphi %s2760_s18, %s3261_s18   ;;  %s2681_s17 = sphi %s2758_s17, %s3260_s17  }
   0x4   : > { %s2783_s23 = sadd.s32 1, %s2693_s20   ;;  %s272_s24 = sadd.s32 1, %s2689_s19 }
   0x5   : > { %s269_s25 = ssub.s32 %s2693_s20, %s2783_s23  ;;  %p282_p0 = scmp.ne.s32.totalorder %s2689_s19, %s2685_s18 }
   0x6   : > { %p270_p1 = scmp.eq.s32.totalorder %s269_s25, 0  ;;  %p283_p2 = scmp.eq.s32.totalorder %s2779_s21, 1 }
   0x7   : > { %p288_p3 = scmp.ne.s32.totalorder %s2685_s18, %s2681_s17  ;;  %p289_p4 = scmp.eq.s32.totalorder %s2070_s22, 1 }
   0x8   : > { %s2794_s26 = scalar_select %p270_p1, %s2689_s19, %s272_s24  }
   0x9   : > { %p2796_p5 = por %p283_p2, %p282_p0  ;;  %p2800_p6 = por %p289_p4, %p288_p3 }
   0xa   : > { %p2073_p7 = scmp.ge.s32.totalorder %s2693_s20, 1  ;;  %p352_p8 = scmp.lt.s32.totalorder %s2693_s20, 3 }
   0xc   : > { %p353_p9 = pnand %p2073_p7, %p352_p8 }
   0xd   : > { %v477_v0 = vld [vmem:[%s3249_s3] sm:$0x3] (!%p353_p9)  ;;  %vm607_vm0 = vcmask (!%p353_p9), 1041408   ;;  %s2075_s12 = sshll.u32 (!%p353_p9), %s2779_s21, 5  ;;  %vm906_vm1 = vcmask (!%p353_p9), 1045504   ;;  %vm558_vm2 = vcmask (!%p353_p9), 31744  }
   0xe   : > { %356 = sbr.rel (%p353_p9) target bundleno = 1014 (0x3f6), region = 64  ;;  %2530 = vmatprep.subr.msk.bf16.mxu0 (!%p353_p9), %vm607_vm0, %v477_v0  ;;  %v609_v1 = vsel (!%p353_p9), %vm607_vm0, %v477_v0, 0  ;;  %p398_p10 = scmp.lt.s32.totalorder (!%p353_p9), %s2075_s12, 63  ;;  %2531 = vmatprep.subr.msk.bf16.mxu1 (!%p353_p9), %vm607_vm0, %v477_v0  ;;  %v2575_v2 = vld [vmem:[%s3248_s2] sm:$0x3f] (!%p353_p9)   ;;  %v2608_v12 = vld [vmem:[%s3251_s5 + $0x8] sm:$0xff] (!%p353_p9)  }
   0xf   : > { %2285 = vmatpush3.bf16.msra.mxu0 (!%p353_p9), %v609_v1  ;;  %2497 = vmatpush3.bf16.msra.mxu1 (!%p353_p9), %v609_v1  ;;  %v2607_v3 = vld [vmem:[%s3251_s5] sm:$0xff] (!%p353_p9)   ;;  %v908_v6 = vsel (!%p353_p9), %vm906_vm1, %v2575_v2, 0  ;;  %v2609_v15 = vld [vmem:[%s3251_s5 + $0x10] sm:$0xff] (!%p353_p9)   ;;  %vm857_vm3 = vcmask (!%p353_p9), 97280   ;;  %v2610_v21 = vld [vmem:[%s3251_s5 + $0x18] sm:$0xff] (!%p353_p9)   ;;  %s2695_s25 = smov (!%p353_p9), [#allocation2]  }
  0x10   : > { %2532 = vmatprep.subr.msk.bf16.mxu0 (!%p353_p9), %vm906_vm1, %v2575_v2  ;;  %2352 = vmatprep.subr.bf16.mxu1 (!%p353_p9), %v2607_v3  ;;  %v2611_v26 = vld [vmem:[%s3251_s5 + $0x20] sm:$0xff] (!%p353_p9)   ;;  %v2612_v27 = vld [vmem:[%s3251_s5 + $0x28] sm:$0xff] (!%p353_p9)   ;;  %v2613_v42 = vld [vmem:[%s3251_s5 + $0x30] sm:$0xff] (!%p353_p9)   ;;  %s2635_s30 = sshll.u32 (!%p353_p9), %s2695_s25, 4  ;;  %s2636_s30 = int_to_ptr.vmem [resolvable:$false] %s2635_s30 }
  0x11   : > { %v2614_v43 = vld [vmem:[%s3251_s5 + $0x38] sm:$0xff] (!%p353_p9)   ;;  %v2615_v44 = vld [vmem:[%s3253_s7] sm:$0xff] (!%p353_p9)  }
  0x12   : > { %v2935_v53 = vld [vmem:[%s3250_s4] ss:$0 sm:$0xff] (!%p353_p9) }
  0x15   : > { %s3265_s12 = smov (!%p398_p10, %s2075_s12), 63 }
  0x16   : > { %s2076_s22 = sshll.u32 %s3265_s12, 2  ;;  %s2177_s12 = sshll.u32 %s2779_s21, 12 }
  0x17   : > { %s2820_s29 = scalar_lea.vmem %s3247_s1, %s2076_s22  ;;  %s2832_s13 = scalar_lea.vmem %s3246_s0, %s2076_s22 }
  0x18   : > { %v2574_v4 = vld [vmem:[%s2820_s29] sm:$0xff]   ;;  %v2576_v5 = vld [vmem:[%s2820_s29 + $0x8] sm:$0xff]   ;;  %v2577_v7 = vld [vmem:[%s2820_s29 + $0x10] sm:$0xff]   ;;  %s394_s22 = sand.u32 1, %s2685_s18   ;;  %s3195_s16 = scalar_lea.hbm %s3257_s11, %s2177_s12 }
  0x19   : > { %2286 = vmatprep.mubr.msk.bf16.mxu0 %vm558_vm2, %v2574_v4  ;;  %v2578_v8 = vld [vmem:[%s2820_s29 + $0x18] sm:$0xff]   ;;  %v2579_v9 = vld [vmem:[%s2820_s29 + $0x20] sm:$0xff]   ;;  %v2580_v10 = vld [vmem:[%s2820_s29 + $0x28] sm:$0xff]   ;;  %s2074_s24 = sshll.u32 %s394_s22, 8  ;;  %s3205_s21 = scalar_lea.sflag [#allocation3], %s394_s22 }
  0x1a   : > { %2287 = vmatmul.mubr.msk.bf16.vlgmr.msra.gmra.mrb[0].mxu0 %vm558_vm2, %v2576_v5  ;;  %v2581_v11 = vld [vmem:[%s2820_s29 + $0x30] sm:$0xff]   ;;  %v2591_v13 = vld [vmem:[%s2820_s29 + $0x40] sm:$0xff]   ;;  %v2592_v14 = vld [vmem:[%s2820_s29 + $0x48] sm:$0xff]   ;;  %s2637_s12 = scalar_lea.vmem %s2636_s30, 8192 }
  0x1b   : > { %2319 = vmatpush3.bf16.msra.mxu0 %v908_v6  ;;  %2290 = vmatprep.mubr.msk.bf16.mxu0 %vm558_vm2, %v2577_v7  ;;  %v2595_v16 = vld [vmem:[%s2820_s29 + $0x50] sm:$0xff]   ;;  %v2582_v17 = vld [vmem:[%s2820_s29 + $0x38] sm:$0xff]   ;;  %v2583_v18 = vld [vmem:[%s2832_s13] sm:$0xff]  }
  0x1c   : > { %2302 = vmatprep.mubr.msk.bf16.mxu1 %vm558_vm2, %v2591_v13  ;;  %v2596_v19 = vld [vmem:[%s2820_s29 + $0x58] sm:$0xff]   ;;  %v2599_v20 = vld [vmem:[%s2820_s29 + $0x60] sm:$0xff]   ;;  %v2584_v22 = vld [vmem:[%s2832_s13 + $0x8] sm:$0xff]  }
  0x1d   : > { %2303 = vmatmul.mubr.msk.bf16.vlgmr.msra.gmra.mrb[0].mxu1 %vm558_vm2, %v2592_v14  ;;  %v2585_v23 = vld [vmem:[%s2832_s13 + $0x10] sm:$0xff]   ;;  %v2600_v24 = vld [vmem:[%s2820_s29 + $0x68] sm:$0xff]   ;;  %v2586_v28 = vld [vmem:[%s2832_s13 + $0x18] sm:$0xff]  }
  0x1e   : > { %2353 = vmatpush3.bf16.msra.mxu1 %v2607_v3  ;;  %2306 = vmatprep.mubr.msk.bf16.mxu1 %vm558_vm2, %v2595_v16  ;;  %v2603_v25 = vld [vmem:[%s2820_s29 + $0x70] sm:$0xff]   ;;  %v2604_v29 = vld [vmem:[%s2820_s29 + $0x78] sm:$0xff]   ;;  %v2587_v30 = vld [vmem:[%s2832_s13 + $0x20] sm:$0xff]  }
  0x1f   : > { %2354 = vmatprep.subr.bf16.mxu1 %v2608_v12  ;;  %v2588_v31 = vld [vmem:[%s2832_s13 + $0x28] sm:$0xff]   ;;  %v2589_v32 = vld [vmem:[%s2832_s13 + $0x30] sm:$0xff]   ;;  %v2590_v33 = vld [vmem:[%s2832_s13 + $0x38] sm:$0xff]  }
  0x20   : > { %v2593_v34 = vld [vmem:[%s2832_s13 + $0x40] sm:$0xff]   ;;  %v2594_v35 = vld [vmem:[%s2832_s13 + $0x48] sm:$0xff]   ;;  %v2597_v36 = vld [vmem:[%s2832_s13 + $0x50] sm:$0xff]  }
  0x21   : > { %v2598_v37 = vld [vmem:[%s2832_s13 + $0x58] sm:$0xff]   ;;  %v2601_v38 = vld [vmem:[%s2832_s13 + $0x60] sm:$0xff]   ;;  %v2602_v39 = vld [vmem:[%s2832_s13 + $0x68] sm:$0xff]  }
  0x22   : > { %2291 = vmatmul.mubr.msk.bf16.gmra.mrb[4].mxu0 %vm558_vm2, %v2578_v8  ;;  %2355 = vmatpush3.bf16.msra.mxu1 %v2608_v12  ;;  %v2605_v40 = vld [vmem:[%s2832_s13 + $0x70] sm:$0xff]   ;;  %v2606_v41 = vld [vmem:[%s2832_s13 + $0x78] sm:$0xff]   ;;  %v2616_v13 = vld [vmem:[%s3253_s7 + $0x8] sm:$0xff]   ;;  %s3130_s13 = scalar_lea.vmem [#allocation2], %s2074_s24 }
  0x23   : > { %2294 = vmatprep.mubr.msk.bf16.mxu0 %vm558_vm2, %v2579_v9  ;;  %2356 = vmatprep.subr.bf16.mxu1 %v2609_v15  ;;  %s1996_s14 = sshll.u32 %s3130_s13, 4  ;;  %s3197_s14 = int_to_ptr.vmem [resolvable:$true] %s1996_s14 }
  0x24   : > { %s2631_s24 = scalar_lea.vmem %s3197_s14, 4096  ;;  %p2638_p0 = scmp.lt.s32.totalorder %s3197_s14, %s2636_s30 }
  0x25   : > { %2307 = vmatmul.mubr.msk.bf16.gmra.mrb[4].mxu1 %vm558_vm2, %v2596_v19  ;;  %p2632_p11 = scmp.ne.s32.totalorder %s3197_s14, %s2631_s24  ;;  %p2639_p1 = scmp.lt.s32.totalorder %s2637_s12, %s2631_s24 }
  0x26   : > { %2310 = vmatprep.mubr.msk.bf16.mxu1 %vm558_vm2, %v2599_v20  ;;  %2357 = vmatpush3.bf16.msra.mxu1 %v2609_v15 }
  0x27   : > { %2358 = vmatprep.subr.bf16.mxu1 %v2610_v21  ;;  %p2633_p12 = pnand %p2632_p11, %p2796_p5  ;;  %p2640_p2 = por %p2639_p1, %p2638_p0 }
  0x29   : > { %p2634_p13 = pneg %p2633_p12 }
  0x2a   : > { %2295 = vmatmul.mubr.msk.bf16.gmra.mrb[8].mxu0 %vm558_vm2, %v2580_v10  ;;  %2359 = vmatpush3.bf16.msra.mxu1 %v2610_v21 }
  0x2b   : > { %2298 = vmatprep.mubr.msk.bf16.mxu0 %vm558_vm2, %v2581_v11  ;;  %2360 = vmatprep.subr.bf16.mxu1 %v2611_v26  ;;  %p2641_p3 = pnand %p2640_p2, %p2634_p13 }
  0x2d   : > { %2311 = vmatmul.mubr.msk.bf16.gmra.mrb[8].mxu1 %vm558_vm2, %v2600_v24 }
  0x2e   : > { %2314 = vmatprep.mubr.msk.bf16.mxu1 %vm558_vm2, %v2603_v25  ;;  %2361 = vmatpush3.bf16.msra.mxu1 %v2611_v26 }
  0x2f   : > { %2362 = vmatprep.subr.bf16.mxu1 %v2612_v27 }
  0x32   : > { %2299 = vmatmul.mubr.msk.bf16.gmra.mrb[12].mxu0 %vm558_vm2, %v2582_v17  ;;  %2363 = vmatpush3.bf16.msra.mxu1 %v2612_v27 }
  0x33   : > { %2320 = vmatprep.mubr.msk.bf16.mxu0 %vm857_vm3, %v2583_v18  ;;  %2364 = vmatprep.subr.bf16.mxu1 %v2613_v42 }
  0x35   : > { %2315 = vmatmul.mubr.msk.bf16.gmra.mrb[12].mxu1 %vm558_vm2, %v2604_v29 }
  0x36   : > { %2365 = vmatpush3.bf16.msra.mxu1 %v2613_v42 }
  0x37   : > { %2366 = vmatprep.subr.bf16.mxu1 %v2614_v43 }
  0x3a   : > { %2321 = vmatmul.mubr.msk.bf16.vlgmr.msra.gmra.mrb[0].mxu0 %vm857_vm3, %v2584_v22  ;;  %2367 = vmatpush3.bf16.msra.mxu1 %v2614_v43 }
  0x3b   : > { %2324 = vmatprep.mubr.msk.bf16.mxu0 %vm857_vm3, %v2585_v23  ;;  %2400 = vmatprep.subr.bf16.mxu1 %v2615_v44  ;;  %v2617_v23 = vld [vmem:[%s3253_s7 + $0x10] sm:$0xff]  }
  0x42   : > { %2325 = vmatmul.mubr.msk.bf16.gmra.mrb[4].mxu0 %vm857_vm3, %v2586_v28 }
  0x43   : > { %2328 = vmatprep.mubr.msk.bf16.mxu0 %vm857_vm3, %v2587_v30 }
  0x4a   : > { %2329 = vmatmul.mubr.msk.bf16.gmra.mrb[8].mxu0 %vm857_vm3, %v2588_v31  ;;  %v2618_v31 = vld [vmem:[%s3253_s7 + $0x18] sm:$0xff]  }
  0x4b   : > { %2332 = vmatprep.mubr.msk.bf16.mxu0 %vm857_vm3, %v2589_v32 }
  0x52   : > { %2333 = vmatmul.mubr.msk.bf16.gmra.mrb[12].mxu0 %vm857_vm3, %v2590_v33 }
  0x53   : > { %2336 = vmatprep.mubr.msk.bf16.mxu0 %vm857_vm3, %v2593_v34 }
  0x5a   : > { %2337 = vmatmul.mubr.msk.bf16.gmra.mrb[16].mxu0 %vm857_vm3, %v2594_v35 }
  0x5b   : > { %2340 = vmatprep.mubr.msk.bf16.mxu0 %vm857_vm3, %v2597_v36 }
  0x62   : > { %2341 = vmatmul.mubr.msk.bf16.gmra.mrb[20].mxu0 %vm857_vm3, %v2598_v37 }
  0x63   : > { %2344 = vmatprep.mubr.msk.bf16.mxu0 %vm857_vm3, %v2601_v38 }
  0x6a   : > { %2345 = vmatmul.mubr.msk.bf16.gmra.mrb[24].mxu0 %vm857_vm3, %v2602_v39  ;;  %v2619_v39 = vld [vmem:[%s3253_s7 + $0x20] sm:$0xff]  }
  0x6b   : > { %2348 = vmatprep.mubr.msk.bf16.mxu0 %vm857_vm3, %v2605_v40 }
  0x72   : > { %2349 = vmatmul.mubr.msk.bf16.gmra.mrb[28].mxu0 %vm857_vm3, %v2606_v41 }
  0xf0   : > { %v2916_v45 = vpop.f32.mrb[0].mxu1 }
  0xf1   : > { %v2918_v46 = vpop.f32.mrb[1].mxu1 }
  0xf2   : > { %v2920_v47 = vpop.f32.mrb[2].mxu1 }
  0xf3   : > { %v2922_v48 = vpop.f32.mrb[3].mxu1 }
  0xf8   : > { %v2924_v49 = vpop.f32.mrb[4].mxu1 }
  0xf9   : > { %v2926_v50 = vpop.f32.mrb[5].mxu1 }
  0xfa   : > { %v2928_v51 = vpop.f32.mrb[6].mxu1 }
  0xfb   : > { %v2930_v52 = vpop.f32.mrb[7].mxu1 }
 0x100   : > { %v2937_v55 = vpop.f32.mrb[8].mxu1 }
 0x101   : > { %v2940_v58 = vpop.f32.mrb[9].mxu1 }
 0x102   : > { %v2943_v61 = vpop.f32.mrb[10].mxu1 }
 0x103   : > { %v2946_v0 = vpop.f32.mrb[11].mxu1 }
 0x108   : > { %v2949_v9 = vpop.f32.mrb[12].mxu1 }
 0x109   : > { %v2952_v12 = vpop.f32.mrb[13].mxu1 }
 0x10a   : > { %v2958_v16 = vpop.f32.mrb[14].mxu1 }
 0x10b   : > { %v2961_v19 = vpop.f32.mrb[15].mxu1 }
 0x10d   : > { %v2322_v54 = vpop.f32.mrb[0].mxu0 }
 0x10e   : > { %v1080_v56 = vadd.f32 %v2322_v54, %v2935_v53  ;;  %v944_v57 = vpop.f32.mrb[1].mxu0 }
 0x10f   : > { %v1078_v59 = vadd.f32 %v2935_v53, %v944_v57  ;;  %v2323_v60 = vpop.f32.mrb[2].mxu0  ;;  %v2620_v57 = vld [vmem:[%s3253_s7 + $0x28] sm:$0xff]  }
 0x110   : > { %v1081_v62 = vadd.f32 %v2323_v60, %v2935_v53  ;;  %v947_v63 = vpop.f32.mrb[3].mxu0  ;;  %v1112_v2 = vmax.f32 %v1080_v56, 0.0 }
 0x111   : > { %v1079_v1 = vadd.f32 %v2935_v53, %v947_v63  ;;  %v1110_v4 = vmax.f32 %v1078_v59, 0.0 }
 0x112   : > { %v1113_v3 = vmax.f32 %v1081_v62, 0.0 }
 0x113   : > { %v1111_v5 = vmax.f32 %v1079_v1, 0.0 }
 0x114   : > { %v1143_v6 = vpack.c.bf16 %v1113_v3, %v1112_v2 }
 0x115   : > { %v1142_v7 = vpack.c.bf16 %v1111_v5, %v1110_v4  ;;  %v2326_v8 = vpop.f32.mrb[4].mxu0  ;;  %v2621_v4 = vld [vmem:[%s3253_s7 + $0x30] sm:$0xff]  }
 0x116   : > { %v1084_v10 = vadd.f32 %v2326_v8, %v2935_v53  ;;  %v960_v11 = vpop.f32.mrb[5].mxu0 }
 0x117   : > { %v1082_v14 = vadd.f32 %v2935_v53, %v960_v11  ;;  %v2327_v15 = vpop.f32.mrb[6].mxu0  ;;  %2368 = vmatprep.mubr.bf16.mxu1 %v1142_v7 }
 0x118   : > { %v1085_v17 = vadd.f32 %v2327_v15, %v2935_v53  ;;  %v963_v18 = vpop.f32.mrb[7].mxu0  ;;  %2369 = vmatmul.mubr.bf16.vlgmr.msra.gmra.mrb[16].mxu1 %v1143_v6  ;;  %v1116_v21 = vmax.f32 %v1084_v10, 0.0 }
 0x119   : > { %v1083_v20 = vadd.f32 %v2935_v53, %v963_v18  ;;  %2401 = vmatpush3.bf16.msra.mxu1 %v2615_v44  ;;  %v1114_v24 = vmax.f32 %v1082_v14, 0.0 }
 0x11a   : > { %v1117_v22 = vmax.f32 %v1085_v17, 0.0  ;;  %2402 = vmatprep.subr.bf16.mxu1 %v2616_v13 }
 0x11b   : > { %v1115_v25 = vmax.f32 %v1083_v20, 0.0 }
 0x11c   : > { %v1145_v26 = vpack.c.bf16 %v1117_v22, %v1116_v21 }
 0x11d   : > { %v1144_v27 = vpack.c.bf16 %v1115_v25, %v1114_v24  ;;  %v2330_v28 = vpop.f32.mrb[8].mxu0  ;;  %2403 = vmatpush3.bf16.msra.mxu1 %v2616_v13 }
 0x11e   : > { %v1088_v29 = vadd.f32 %v2330_v28, %v2935_v53  ;;  %v976_v30 = vpop.f32.mrb[9].mxu0  ;;  %2404 = vmatprep.subr.bf16.mxu1 %v2617_v23 }
 0x11f   : > { %v1086_v32 = vadd.f32 %v2935_v53, %v976_v30  ;;  %v2331_v33 = vpop.f32.mrb[10].mxu0  ;;  %2372 = vmatprep.mubr.bf16.mxu1 %v1144_v27 }
 0x120   : > { %v1089_v34 = vadd.f32 %v2331_v33, %v2935_v53  ;;  %v979_v35 = vpop.f32.mrb[11].mxu0  ;;  %2373 = vmatmul.mubr.bf16.gmra.mrb[20].mxu1 %v1145_v26  ;;  %v1120_v37 = vmax.f32 %v1088_v29, 0.0 }
 0x121   : > { %v1087_v36 = vadd.f32 %v2935_v53, %v979_v35  ;;  %2405 = vmatpush3.bf16.msra.mxu1 %v2617_v23  ;;  %v1118_v40 = vmax.f32 %v1086_v32, 0.0 }
 0x122   : > { %v1121_v38 = vmax.f32 %v1089_v34, 0.0  ;;  %2406 = vmatprep.subr.bf16.mxu1 %v2618_v31 }
 0x123   : > { %v1119_v41 = vmax.f32 %v1087_v36, 0.0 }
 0x124   : > { %v1147_v42 = vpack.c.bf16 %v1121_v38, %v1120_v37 }
 0x125   : > { %v1146_v43 = vpack.c.bf16 %v1119_v41, %v1118_v40  ;;  %v2334_v44 = vpop.f32.mrb[12].mxu0  ;;  %2407 = vmatpush3.bf16.msra.mxu1 %v2618_v31 }
 0x126   : > { %v1092_v54 = vadd.f32 %v2334_v44, %v2935_v53  ;;  %v992_v56 = vpop.f32.mrb[13].mxu0  ;;  %2408 = vmatprep.subr.bf16.mxu1 %v2619_v39 }
 0x127   : > { %v1090_v59 = vadd.f32 %v2935_v53, %v992_v56  ;;  %v2335_v60 = vpop.f32.mrb[14].mxu0  ;;  %2376 = vmatprep.mubr.bf16.mxu1 %v1146_v43 }
 0x128   : > { %v1093_v62 = vadd.f32 %v2335_v60, %v2935_v53  ;;  %v995_v63 = vpop.f32.mrb[15].mxu0  ;;  %2377 = vmatmul.mubr.bf16.gmra.mrb[24].mxu1 %v1147_v42  ;;  %v1124_v2 = vmax.f32 %v1092_v54, 0.0 }
 0x129   : > { %v1091_v1 = vadd.f32 %v2935_v53, %v995_v63  ;;  %2409 = vmatpush3.bf16.msra.mxu1 %v2619_v39  ;;  %v1122_v5 = vmax.f32 %v1090_v59, 0.0 }
 0x12a   : > { %v1125_v3 = vmax.f32 %v1093_v62, 0.0  ;;  %2410 = vmatprep.subr.bf16.mxu1 %v2620_v57 }
 0x12b   : > { %v1123_v6 = vmax.f32 %v1091_v1, 0.0 }
 0x12c   : > { %v1149_v7 = vpack.c.bf16 %v1125_v3, %v1124_v2 }
 0x12d   : > { %v1148_v8 = vpack.c.bf16 %v1123_v6, %v1122_v5  ;;  %v2338_v10 = vpop.f32.mrb[16].mxu0  ;;  %2411 = vmatpush3.bf16.msra.mxu1 %v2620_v57 }
 0x12e   : > { %v1017_v11 = vadd.f32 %v2338_v10, %v2916_v45  ;;  %v1008_v13 = vpop.f32.mrb[17].mxu0  ;;  %2412 = vmatprep.subr.bf16.mxu1 %v2621_v4 }
 0x12f   : > { %v1009_v14 = vadd.f32 %v1008_v13, %v2918_v46  ;;  %v2339_v15 = vpop.f32.mrb[18].mxu0  ;;  %2380 = vmatprep.mubr.bf16.mxu1 %v1148_v8 }
 0x130   : > { %v1096_v17 = vadd.f32 %v2935_v53, %v1017_v11  ;;  %v1020_v18 = vadd.f32 %v2339_v15, %v2920_v47  ;;  %v1011_v20 = vpop.f32.mrb[19].mxu0  ;;  %2381 = vmatmul.mubr.bf16.gmra.mrb[28].mxu1 %v1149_v7 }
 0x131   : > { %v1094_v21 = vadd.f32 %v2935_v53, %v1009_v14  ;;  %v1012_v22 = vadd.f32 %v1011_v20, %v2922_v48  ;;  %2413 = vmatpush3.bf16.msra.mxu1 %v2621_v4 }
 0x132   : > { %v1097_v23 = vadd.f32 %v2935_v53, %v1020_v18  ;;  %v1128_v24 = vmax.f32 %v1096_v17, 0.0 }
 0x133   : > { %v1095_v45 = vadd.f32 %v2935_v53, %v1012_v22  ;;  %v1126_v46 = vmax.f32 %v1094_v21, 0.0 }
 0x134   : > { %v1129_v25 = vmax.f32 %v1097_v23, 0.0 }
 0x135   : > { %v1127_v26 = vmax.f32 %v1095_v45, 0.0  ;;  %v2342_v27 = vpop.f32.mrb[20].mxu0  ;;  %v2625_v45 = vld [vmem:[%s3255_s9 + $0x10] sm:$0xff]  }
 0x136   : > { %v1033_v28 = vadd.f32 %v2342_v27, %v2924_v49  ;;  %v1024_v29 = vpop.f32.mrb[21].mxu0  ;;  %v1151_v47 = vpack.c.bf16 %v1129_v25, %v1128_v24  ;;  %v2626_v24 = vld [vmem:[%s3255_s9 + $0x18] sm:$0xff]   ;;  %v2627_v25 = vld [vmem:[%s3255_s9 + $0x20] sm:$0xff]  }
 0x137   : > { %v1025_v30 = vadd.f32 %v1024_v29, %v2926_v50  ;;  %v2343_v31 = vpop.f32.mrb[22].mxu0  ;;  %v1150_v32 = vpack.c.bf16 %v1127_v26, %v1126_v46  ;;  %v2628_v46 = vld [vmem:[%s3255_s9 + $0x28] sm:$0xff]   ;;  %v2629_v26 = vld [vmem:[%s3255_s9 + $0x30] sm:$0xff]   ;;  %v3046_v27 = vld [vmem:[%s3252_s6] ss:$0 sm:$0xff] }
 0x138   : > { %v1100_v48 = vadd.f32 %v2935_v53, %v1033_v28  ;;  %v1036_v33 = vadd.f32 %v2343_v31, %v2928_v51  ;;  %v1027_v34 = vpop.f32.mrb[23].mxu0 }
 0x139   : > { %v1098_v35 = vadd.f32 %v2935_v53, %v1025_v30  ;;  %v1028_v36 = vadd.f32 %v1027_v34, %v2930_v52  ;;  %2384 = vmatprep.mubr.bf16.mxu1 %v1150_v32 }
 0x13a   : > { %v1101_v37 = vadd.f32 %v2935_v53, %v1036_v33  ;;  %2385 = vmatmul.mubr.bf16.gmra.mrb[32].mxu1 %v1151_v47  ;;  %v1132_v38 = vmax.f32 %v1100_v48, 0.0 }
 0x13b   : > { %v1099_v49 = vadd.f32 %v2935_v53, %v1028_v36  ;;  %v1130_v50 = vmax.f32 %v1098_v35, 0.0 }
 0x13c   : > { %v1133_v39 = vmax.f32 %v1101_v37, 0.0 }
 0x13d   : > { %v1131_v40 = vmax.f32 %v1099_v49, 0.0  ;;  %v2346_v41 = vpop.f32.mrb[24].mxu0 }
 0x13e   : > { %v1049_v42 = vadd.f32 %v2346_v41, %v2937_v55  ;;  %v1040_v43 = vpop.f32.mrb[25].mxu0  ;;  %v1153_v51 = vpack.c.bf16 %v1133_v39, %v1132_v38 }
 0x13f   : > { %v1041_v44 = vadd.f32 %v1040_v43, %v2940_v58  ;;  %v2347_v54 = vpop.f32.mrb[26].mxu0  ;;  %v1152_v56 = vpack.c.bf16 %v1131_v40, %v1130_v50 }
 0x140   : > { %v1104_v52 = vadd.f32 %v2935_v53, %v1049_v42  ;;  %v1052_v57 = vadd.f32 %v2347_v54, %v2943_v61  ;;  %v1043_v59 = vpop.f32.mrb[27].mxu0 }
 0x141   : > { %v1102_v60 = vadd.f32 %v2935_v53, %v1041_v44  ;;  %v1044_v62 = vadd.f32 %v1043_v59, %v2946_v0  ;;  %2388 = vmatprep.mubr.bf16.mxu1 %v1152_v56 }
 0x142   : > { %v1105_v63 = vadd.f32 %v2935_v53, %v1052_v57  ;;  %2389 = vmatmul.mubr.bf16.gmra.mrb[36].mxu1 %v1153_v51  ;;  %v1136_v1 = vmax.f32 %v1104_v52, 0.0 }
 0x143   : > { %v1103_v55 = vadd.f32 %v2935_v53, %v1044_v62  ;;  %v1134_v58 = vmax.f32 %v1102_v60, 0.0 }
 0x144   : > { %v1137_v2 = vmax.f32 %v1105_v63, 0.0 }
 0x145   : > { %v1135_v3 = vmax.f32 %v1103_v55, 0.0  ;;  %v2350_v4 = vpop.f32.mrb[28].mxu0 }
 0x146   : > { %v1065_v5 = vadd.f32 %v2350_v4, %v2949_v9  ;;  %v1056_v6 = vpop.f32.mrb[29].mxu0  ;;  %v1155_v61 = vpack.c.bf16 %v1137_v2, %v1136_v1 }
 0x147   : > { %v1057_v7 = vadd.f32 %v1056_v6, %v2952_v12  ;;  %v2351_v8 = vpop.f32.mrb[30].mxu0  ;;  %v1154_v10 = vpack.c.bf16 %v1135_v3, %v1134_v58 }
 0x148   : > { %v1108_v0 = vadd.f32 %v2935_v53, %v1065_v5  ;;  %v1068_v11 = vadd.f32 %v2351_v8, %v2958_v16  ;;  %v1059_v13 = vpop.f32.mrb[31].mxu0  ;;  %v2622_v16 = vld [vmem:[%s3253_s7 + $0x38] sm:$0xff]  }
 0x149   : > { %v1106_v14 = vadd.f32 %v2935_v53, %v1057_v7  ;;  %v1060_v15 = vadd.f32 %v1059_v13, %v2961_v19  ;;  %2392 = vmatprep.mubr.bf16.mxu1 %v1154_v10  ;;  %2414 = vmatprep.subr.bf16.mxu1 %v2622_v16  ;;  %v2623_v19 = vld [vmem:[%s3255_s9] sm:$0xff]  }
 0x14a   : > { %v1109_v17 = vadd.f32 %v2935_v53, %v1068_v11  ;;  %2393 = vmatmul.mubr.bf16.gmra.mrb[40].mxu1 %v1155_v61  ;;  %v1140_v18 = vmax.f32 %v1108_v0, 0.0  ;;  %2448 = vmatprep.subr.bf16.mxu0 %v2623_v19 }
 0x14b   : > { %v1107_v9 = vadd.f32 %v2935_v53, %v1060_v15  ;;  %v1138_v12 = vmax.f32 %v1106_v14, 0.0  ;;  %2415 = vmatpush3.bf16.msra.mxu1 %v2622_v16  ;;  %v2624_v53 = vld [vmem:[%s3255_s9 + $0x8] sm:$0xff]   ;;  %2449 = vmatpush3.bf16.msra.mxu0 %v2623_v19 }
 0x14c   : > { %v1141_v20 = vmax.f32 %v1109_v17, 0.0  ;;  %2450 = vmatprep.subr.bf16.mxu0 %v2624_v53 }
 0x14d   : > { %v1139_v21 = vmax.f32 %v1107_v9, 0.0 }
 0x14e   : > { %v1157_v22 = vpack.c.bf16 %v1141_v20, %v1140_v18 }
 0x14f   : > { %v1156_v23 = vpack.c.bf16 %v1139_v21, %v1138_v12  ;;  %2451 = vmatpush3.bf16.msra.mxu0 %v2624_v53 }
 0x150   : > { %2452 = vmatprep.subr.bf16.mxu0 %v2625_v45 }
 0x151   : > { %2396 = vmatprep.mubr.bf16.mxu1 %v1156_v23 }
 0x152   : > { %2397 = vmatmul.mubr.bf16.gmra.mrb[44].mxu1 %v1157_v22 }
 0x153   : > { %2453 = vmatpush3.bf16.msra.mxu0 %v2625_v45 }
 0x154   : > { %2454 = vmatprep.subr.bf16.mxu0 %v2626_v24 }
 0x157   : > { %2455 = vmatpush3.bf16.msra.mxu0 %v2626_v24 }
 0x158   : > { %2456 = vmatprep.subr.bf16.mxu0 %v2627_v25 }
 0x15b   : > { %2457 = vmatpush3.bf16.msra.mxu0 %v2627_v25 }
 0x15c   : > { %2458 = vmatprep.subr.bf16.mxu0 %v2628_v46 }
 0x15f   : > { %2459 = vmatpush3.bf16.msra.mxu0 %v2628_v46 }
 0x160   : > { %2460 = vmatprep.subr.bf16.mxu0 %v2629_v26 }
 0x163   : > { %2461 = vmatpush3.bf16.msra.mxu0 %v2629_v26 }
 0x1eb   : > { %v2370_v28 = vpop.f32.mrb[16].mxu1 }
 0x1ec   : > { %v1272_v29 = vadd.f32 %v2370_v28, %v3046_v27  ;;  %v1263_v47 = vpop.f32.mrb[17].mxu1 }
 0x1ed   : > { %v1264_v30 = vadd.f32 %v3046_v27, %v1263_v47  ;;  %v2371_v31 = vpop.f32.mrb[18].mxu1 }
 0x1ee   : > { %v1275_v32 = vadd.f32 %v2371_v31, %v3046_v27  ;;  %v1266_v48 = vpop.f32.mrb[19].mxu1  ;;  %v1392_v34 = vmax.f32 %v1272_v29, 0.0 }
 0x1ef   : > { %v1267_v33 = vadd.f32 %v3046_v27, %v1266_v48  ;;  %v1390_v36 = vmax.f32 %v1264_v30, 0.0 }
 0x1f0   : > { %v1393_v35 = vmax.f32 %v1275_v32, 0.0 }
 0x1f1   : > { %v1391_v37 = vmax.f32 %v1267_v33, 0.0 }
 0x1f2   : > { %v1423_v49 = vpack.c.bf16 %v1393_v35, %v1392_v34 }
 0x1f3   : > { %v1422_v38 = vpack.c.bf16 %v1391_v37, %v1390_v36  ;;  %v2374_v39 = vpop.f32.mrb[20].mxu1 }
 0x1f4   : > { %v1288_v50 = vadd.f32 %v2374_v39, %v3046_v27  ;;  %v1279_v40 = vpop.f32.mrb[21].mxu1 }
 0x1f5   : > { %v1280_v41 = vadd.f32 %v3046_v27, %v1279_v40  ;;  %v2375_v42 = vpop.f32.mrb[22].mxu1  ;;  %2416 = vmatprep.mubr.bf16.mxu1 %v1422_v38 }
 0x1f6   : > { %v1291_v43 = vadd.f32 %v2375_v42, %v3046_v27  ;;  %v1282_v51 = vpop.f32.mrb[23].mxu1  ;;  %2417 = vmatmul.mubr.bf16.vlgmr.msra.gmra.mrb[48].mxu1 %v1423_v49  ;;  %v1396_v54 = vmax.f32 %v1288_v50, 0.0 }
 0x1f7   : > { %v1283_v44 = vadd.f32 %v3046_v27, %v1282_v51  ;;  %v1394_v52 = vmax.f32 %v1280_v41, 0.0 }
 0x1f8   : > { %v1397_v56 = vmax.f32 %v1291_v43, 0.0 }
 0x1f9   : > { %v1395_v57 = vmax.f32 %v1283_v44, 0.0 }
 0x1fa   : > { %v1425_v59 = vpack.c.bf16 %v1397_v56, %v1396_v54 }
 0x1fb   : > { %v1424_v60 = vpack.c.bf16 %v1395_v57, %v1394_v52  ;;  %v2378_v62 = vpop.f32.mrb[24].mxu1 }
 0x1fc   : > { %v1304_v63 = vadd.f32 %v2378_v62, %v3046_v27  ;;  %v1295_v55 = vpop.f32.mrb[25].mxu1 }
 0x1fd   : > { %v1296_v1 = vadd.f32 %v3046_v27, %v1295_v55  ;;  %v2379_v2 = vpop.f32.mrb[26].mxu1  ;;  %2420 = vmatprep.mubr.bf16.mxu1 %v1424_v60 }
 0x1fe   : > { %v1307_v58 = vadd.f32 %v2379_v2, %v3046_v27  ;;  %v1298_v3 = vpop.f32.mrb[27].mxu1  ;;  %2421 = vmatmul.mubr.bf16.gmra.mrb[52].mxu1 %v1425_v59  ;;  %v1400_v5 = vmax.f32 %v1304_v63, 0.0 }
 0x1ff   : > { %v1299_v4 = vadd.f32 %v3046_v27, %v1298_v3  ;;  %v1398_v61 = vmax.f32 %v1296_v1, 0.0 }
 0x200   : > { %v1401_v6 = vmax.f32 %v1307_v58, 0.0 }
 0x201   : > { %v1399_v7 = vmax.f32 %v1299_v4, 0.0 }
 0x202   : > { %v1427_v8 = vpack.c.bf16 %v1401_v6, %v1400_v5 }
 0x203   : > { %v1426_v10 = vpack.c.bf16 %v1399_v7, %v1398_v61  ;;  %v2382_v0 = vpop.f32.mrb[28].mxu1 }
 0x204   : > { %v1320_v11 = vadd.f32 %v2382_v0, %v3046_v27  ;;  %v1311_v13 = vpop.f32.mrb[29].mxu1 }
 0x205   : > { %v1312_v14 = vadd.f32 %v3046_v27, %v1311_v13  ;;  %v2383_v15 = vpop.f32.mrb[30].mxu1  ;;  %2424 = vmatprep.mubr.bf16.mxu1 %v1426_v10 }
 0x206   : > { %v1323_v17 = vadd.f32 %v2383_v15, %v3046_v27  ;;  %v1314_v9 = vpop.f32.mrb[31].mxu1  ;;  %2425 = vmatmul.mubr.bf16.gmra.mrb[56].mxu1 %v1427_v8  ;;  %v1404_v20 = vmax.f32 %v1320_v11, 0.0 }
 0x207   : > { %v1315_v18 = vadd.f32 %v3046_v27, %v1314_v9  ;;  %v1402_v21 = vmax.f32 %v1312_v14, 0.0 }
 0x208   : > { %v1405_v12 = vmax.f32 %v1323_v17, 0.0 }
 0x209   : > { %v1403_v22 = vmax.f32 %v1315_v18, 0.0  ;;  %v2630_v18 = vld [vmem:[%s3255_s9 + $0x38] sm:$0xff]  }
 0x20a   : > { %v1429_v23 = vpack.c.bf16 %v1405_v12, %v1404_v20  ;;  %2462 = vmatprep.subr.bf16.mxu0 %v2630_v18  ;;  %v3086_v20 = vld [vmem:[%s3254_s8] ss:$0 sm:$0xff] }
 0x20b   : > { %v1428_v16 = vpack.c.bf16 %v1403_v22, %v1402_v21  ;;  %2463 = vmatpush3.bf16.msra.mxu0 %v2630_v18 }
 0x20d   : > { %v2386_v19 = vpop.f32.mrb[32].mxu1  ;;  %2428 = vmatprep.mubr.bf16.mxu1 %v1428_v16 }
 0x20e   : > { %v1336_v53 = vadd.f32 %v2386_v19, %v3046_v27  ;;  %v1327_v45 = vpop.f32.mrb[33].mxu1  ;;  %2429 = vmatmul.mubr.bf16.gmra.mrb[60].mxu1 %v1429_v23 }
 0x20f   : > { %v1328_v24 = vadd.f32 %v3046_v27, %v1327_v45  ;;  %v2387_v25 = vpop.f32.mrb[34].mxu1 }
 0x210   : > { %v1339_v46 = vadd.f32 %v2387_v25, %v3046_v27  ;;  %v1330_v26 = vpop.f32.mrb[35].mxu1  ;;  %v1408_v29 = vmax.f32 %v1336_v53, 0.0 }
 0x211   : > { %v1331_v28 = vadd.f32 %v3046_v27, %v1330_v26  ;;  %v1406_v30 = vmax.f32 %v1328_v24, 0.0 }
 0x212   : > { %v1409_v47 = vmax.f32 %v1339_v46, 0.0 }
 0x213   : > { %v1407_v31 = vmax.f32 %v1331_v28, 0.0 }
 0x214   : > { %v1431_v32 = vpack.c.bf16 %v1409_v47, %v1408_v29 }
 0x215   : > { %v1430_v48 = vpack.c.bf16 %v1407_v31, %v1406_v30  ;;  %v2390_v33 = vpop.f32.mrb[36].mxu1 }
 0x216   : > { %v1352_v34 = vadd.f32 %v2390_v33, %v3046_v27  ;;  %v1343_v35 = vpop.f32.mrb[37].mxu1 }
 0x217   : > { %v1344_v36 = vadd.f32 %v3046_v27, %v1343_v35  ;;  %v2391_v37 = vpop.f32.mrb[38].mxu1  ;;  %2432 = vmatprep.mubr.bf16.mxu1 %v1430_v48 }
 0x218   : > { %v1355_v49 = vadd.f32 %v2391_v37, %v3046_v27  ;;  %v1346_v38 = vpop.f32.mrb[39].mxu1  ;;  %2433 = vmatmul.mubr.bf16.gmra.mrb[64].mxu1 %v1431_v32  ;;  %v1412_v50 = vmax.f32 %v1352_v34, 0.0 }
 0x219   : > { %v1347_v39 = vadd.f32 %v3046_v27, %v1346_v38  ;;  %v1410_v41 = vmax.f32 %v1344_v36, 0.0 }
 0x21a   : > { %v1413_v40 = vmax.f32 %v1355_v49, 0.0 }
 0x21b   : > { %v1411_v42 = vmax.f32 %v1347_v39, 0.0 }
 0x21c   : > { %v1433_v43 = vpack.c.bf16 %v1413_v40, %v1412_v50 }
 0x21d   : > { %v1432_v51 = vpack.c.bf16 %v1411_v42, %v1410_v41  ;;  %v2394_v44 = vpop.f32.mrb[40].mxu1 }
 0x21e   : > { %v1368_v54 = vadd.f32 %v2394_v44, %v3046_v27  ;;  %v1359_v56 = vpop.f32.mrb[41].mxu1 }
 0x21f   : > { %v1360_v52 = vadd.f32 %v3046_v27, %v1359_v56  ;;  %v2395_v57 = vpop.f32.mrb[42].mxu1  ;;  %2436 = vmatprep.mubr.bf16.mxu1 %v1432_v51 }
 0x220   : > { %v1371_v59 = vadd.f32 %v2395_v57, %v3046_v27  ;;  %v1362_v60 = vpop.f32.mrb[43].mxu1  ;;  %2437 = vmatmul.mubr.bf16.gmra.mrb[68].mxu1 %v1433_v43  ;;  %v1416_v63 = vmax.f32 %v1368_v54, 0.0 }
 0x221   : > { %v1363_v62 = vadd.f32 %v3046_v27, %v1362_v60  ;;  %v1414_v1 = vmax.f32 %v1360_v52, 0.0 }
 0x222   : > { %v1417_v55 = vmax.f32 %v1371_v59, 0.0 }
 0x223   : > { %v1415_v2 = vmax.f32 %v1363_v62, 0.0 }
 0x224   : > { %v1435_v58 = vpack.c.bf16 %v1417_v55, %v1416_v63 }
 0x225   : > { %v1434_v3 = vpack.c.bf16 %v1415_v2, %v1414_v1  ;;  %v2398_v4 = vpop.f32.mrb[44].mxu1 }
 0x226   : > { %v1384_v5 = vadd.f32 %v2398_v4, %v3046_v27  ;;  %v1375_v6 = vpop.f32.mrb[45].mxu1 }
 0x227   : > { %v1376_v61 = vadd.f32 %v3046_v27, %v1375_v6  ;;  %v2399_v7 = vpop.f32.mrb[46].mxu1  ;;  %2440 = vmatprep.mubr.bf16.mxu1 %v1434_v3 }
 0x228   : > { %v1387_v8 = vadd.f32 %v2399_v7, %v3046_v27  ;;  %v1378_v10 = vpop.f32.mrb[47].mxu1  ;;  %2441 = vmatmul.mubr.bf16.gmra.mrb[72].mxu1 %v1435_v58  ;;  %v1420_v11 = vmax.f32 %v1384_v5, 0.0 }
 0x229   : > { %v1379_v0 = vadd.f32 %v3046_v27, %v1378_v10  ;;  %v1418_v14 = vmax.f32 %v1376_v61, 0.0 }
 0x22a   : > { %v1421_v13 = vmax.f32 %v1387_v8, 0.0 }
 0x22b   : > { %v1419_v15 = vmax.f32 %v1379_v0, 0.0 }
 0x22c   : > { %v1437_v17 = vpack.c.bf16 %v1421_v13, %v1420_v11 }
 0x22d   : > { %v1436_v9 = vpack.c.bf16 %v1419_v15, %v1418_v14 }
 0x22f   : > { %2444 = vmatprep.mubr.bf16.mxu1 %v1436_v9 }
 0x230   : > { %2445 = vmatmul.mubr.bf16.gmra.mrb[76].mxu1 %v1437_v17 }
 0x2c9   : > { %v2418_v27 = vpop.f32.mrb[48].mxu1 }
 0x2ca   : > { %v1552_v12 = vadd.f32 %v2418_v27, %v3086_v20  ;;  %v1543_v21 = vpop.f32.mrb[49].mxu1 }
 0x2cb   : > { %v1544_v22 = vadd.f32 %v3086_v20, %v1543_v21  ;;  %v2419_v23 = vpop.f32.mrb[50].mxu1 }
 0x2cc   : > { %v1555_v16 = vadd.f32 %v2419_v23, %v3086_v20  ;;  %v1546_v19 = vpop.f32.mrb[51].mxu1  ;;  %v1672_v45 = vmax.f32 %v1552_v12, 0.0 }
 0x2cd   : > { %v1547_v53 = vadd.f32 %v3086_v20, %v1546_v19  ;;  %v1670_v25 = vmax.f32 %v1544_v22, 0.0 }
 0x2ce   : > { %v1673_v24 = vmax.f32 %v1555_v16, 0.0 }
 0x2cf   : > { %v1671_v46 = vmax.f32 %v1547_v53, 0.0 }
 0x2d0   : > { %v1703_v26 = vpack.c.bf16 %v1673_v24, %v1672_v45 }
 0x2d1   : > { %v1702_v28 = vpack.c.bf16 %v1671_v46, %v1670_v25  ;;  %v2422_v29 = vpop.f32.mrb[52].mxu1 }
 0x2d2   : > { %v1568_v47 = vadd.f32 %v2422_v29, %v3086_v20  ;;  %v1559_v30 = vpop.f32.mrb[53].mxu1 }
 0x2d3   : > { %v1560_v31 = vadd.f32 %v3086_v20, %v1559_v30  ;;  %v2423_v32 = vpop.f32.mrb[54].mxu1  ;;  %2464 = vmatprep.mubr.bf16.mxu0 %v1702_v28 }
 0x2d4   : > { %v1571_v48 = vadd.f32 %v2423_v32, %v3086_v20  ;;  %v1562_v33 = vpop.f32.mrb[55].mxu1  ;;  %2465 = vmatmul.mubr.bf16.vlgmr.msra.gmra.mrb[32].mxu0 %v1703_v26  ;;  %v1676_v35 = vmax.f32 %v1568_v47, 0.0 }
 0x2d5   : > { %v1563_v34 = vadd.f32 %v3086_v20, %v1562_v33  ;;  %v1674_v37 = vmax.f32 %v1560_v31, 0.0 }
 0x2d6   : > { %v1677_v36 = vmax.f32 %v1571_v48, 0.0 }
 0x2d7   : > { %v1675_v49 = vmax.f32 %v1563_v34, 0.0 }
 0x2d8   : > { %v1705_v38 = vpack.c.bf16 %v1677_v36, %v1676_v35 }
 0x2d9   : > { %v1704_v39 = vpack.c.bf16 %v1675_v49, %v1674_v37  ;;  %v2426_v50 = vpop.f32.mrb[56].mxu1 }
 0x2da   : > { %v1584_v40 = vadd.f32 %v2426_v50, %v3086_v20  ;;  %v1575_v41 = vpop.f32.mrb[57].mxu1 }
 0x2db   : > { %v1576_v42 = vadd.f32 %v3086_v20, %v1575_v41  ;;  %v2427_v43 = vpop.f32.mrb[58].mxu1  ;;  %2468 = vmatprep.mubr.bf16.mxu0 %v1704_v39 }
 0x2dc   : > { %v1587_v51 = vadd.f32 %v2427_v43, %v3086_v20  ;;  %v1578_v44 = vpop.f32.mrb[59].mxu1  ;;  %2469 = vmatmul.mubr.bf16.gmra.mrb[36].mxu0 %v1705_v38  ;;  %v1680_v56 = vmax.f32 %v1584_v40, 0.0 }
 0x2dd   : > { %v1579_v54 = vadd.f32 %v3086_v20, %v1578_v44  ;;  %v1678_v57 = vmax.f32 %v1576_v42, 0.0 }
 0x2de   : > { %v1681_v52 = vmax.f32 %v1587_v51, 0.0 }
 0x2df   : > { %v1679_v59 = vmax.f32 %v1579_v54, 0.0 }
 0x2e0   : > { %v1707_v60 = vpack.c.bf16 %v1681_v52, %v1680_v56 }
 0x2e1   : > { %v1706_v62 = vpack.c.bf16 %v1679_v59, %v1678_v57  ;;  %v2430_v63 = vpop.f32.mrb[60].mxu1 }
 0x2e2   : > { %v1600_v55 = vadd.f32 %v2430_v63, %v3086_v20  ;;  %v1591_v1 = vpop.f32.mrb[61].mxu1 }
 0x2e3   : > { %v1592_v2 = vadd.f32 %v3086_v20, %v1591_v1  ;;  %v2431_v58 = vpop.f32.mrb[62].mxu1  ;;  %2472 = vmatprep.mubr.bf16.mxu0 %v1706_v62 }
 0x2e4   : > { %v1603_v3 = vadd.f32 %v2431_v58, %v3086_v20  ;;  %v1594_v4 = vpop.f32.mrb[63].mxu1  ;;  %2473 = vmatmul.mubr.bf16.gmra.mrb[40].mxu0 %v1707_v60  ;;  %v1684_v6 = vmax.f32 %v1600_v55, 0.0 }
 0x2e5   : > { %v1595_v5 = vadd.f32 %v3086_v20, %v1594_v4  ;;  %v1682_v7 = vmax.f32 %v1592_v2, 0.0 }
 0x2e6   : > { %v1685_v61 = vmax.f32 %v1603_v3, 0.0 }
 0x2e7   : > { %v1683_v8 = vmax.f32 %v1595_v5, 0.0  ;;  %v3126_v5 = vld [vmem:[%s3256_s10] ss:$0 sm:$0xff] }
 0x2e8   : > { %v1709_v10 = vpack.c.bf16 %v1685_v61, %v1684_v6 }
 0x2e9   : > { %v1708_v0 = vpack.c.bf16 %v1683_v8, %v1682_v7 }
 0x2eb   : > { %v2434_v11 = vpop.f32.mrb[64].mxu1  ;;  %2476 = vmatprep.mubr.bf16.mxu0 %v1708_v0 }
 0x2ec   : > { %v1616_v13 = vadd.f32 %v2434_v11, %v3086_v20  ;;  %v1607_v14 = vpop.f32.mrb[65].mxu1  ;;  %2477 = vmatmul.mubr.bf16.gmra.mrb[44].mxu0 %v1709_v10 }
 0x2ed   : > { %v1608_v15 = vadd.f32 %v3086_v20, %v1607_v14  ;;  %v2435_v17 = vpop.f32.mrb[66].mxu1 }
 0x2ee   : > { %v1619_v9 = vadd.f32 %v2435_v17, %v3086_v20  ;;  %v1610_v18 = vpop.f32.mrb[67].mxu1  ;;  %v1688_v12 = vmax.f32 %v1616_v13, 0.0 }
 0x2ef   : > { %v1611_v27 = vadd.f32 %v3086_v20, %v1610_v18  ;;  %v1686_v22 = vmax.f32 %v1608_v15, 0.0 }
 0x2f0   : > { %v1689_v21 = vmax.f32 %v1619_v9, 0.0 }
 0x2f1   : > { %v1687_v23 = vmax.f32 %v1611_v27, 0.0 }
 0x2f2   : > { %v1711_v16 = vpack.c.bf16 %v1689_v21, %v1688_v12 }
 0x2f3   : > { %v1710_v19 = vpack.c.bf16 %v1687_v23, %v1686_v22  ;;  %v2438_v53 = vpop.f32.mrb[68].mxu1 }
 0x2f4   : > { %v1632_v45 = vadd.f32 %v2438_v53, %v3086_v20  ;;  %v1623_v24 = vpop.f32.mrb[69].mxu1 }
 0x2f5   : > { %v1624_v25 = vadd.f32 %v3086_v20, %v1623_v24  ;;  %v2439_v46 = vpop.f32.mrb[70].mxu1  ;;  %2480 = vmatprep.mubr.bf16.mxu0 %v1710_v19 }
 0x2f6   : > { %v1635_v26 = vadd.f32 %v2439_v46, %v3086_v20  ;;  %v1626_v28 = vpop.f32.mrb[71].mxu1  ;;  %2481 = vmatmul.mubr.bf16.gmra.mrb[48].mxu0 %v1711_v16  ;;  %v1692_v47 = vmax.f32 %v1632_v45, 0.0 }
 0x2f7   : > { %v1627_v29 = vadd.f32 %v3086_v20, %v1626_v28  ;;  %v1690_v31 = vmax.f32 %v1624_v25, 0.0 }
 0x2f8   : > { %v1693_v30 = vmax.f32 %v1635_v26, 0.0 }
 0x2f9   : > { %v1691_v32 = vmax.f32 %v1627_v29, 0.0 }
 0x2fa   : > { %v1713_v48 = vpack.c.bf16 %v1693_v30, %v1692_v47 }
 0x2fb   : > { %v1712_v33 = vpack.c.bf16 %v1691_v32, %v1690_v31  ;;  %v2442_v34 = vpop.f32.mrb[72].mxu1 }
 0x2fc   : > { %v1648_v35 = vadd.f32 %v2442_v34, %v3086_v20  ;;  %v1639_v36 = vpop.f32.mrb[73].mxu1 }
 0x2fd   : > { %v1640_v37 = vadd.f32 %v3086_v20, %v1639_v36  ;;  %v2443_v49 = vpop.f32.mrb[74].mxu1  ;;  %2484 = vmatprep.mubr.bf16.mxu0 %v1712_v33 }
 0x2fe   : > { %v1651_v38 = vadd.f32 %v2443_v49, %v3086_v20  ;;  %v1642_v39 = vpop.f32.mrb[75].mxu1  ;;  %2485 = vmatmul.mubr.bf16.gmra.mrb[52].mxu0 %v1713_v48  ;;  %v1696_v40 = vmax.f32 %v1648_v35, 0.0 }
 0x2ff   : > { %v1643_v50 = vadd.f32 %v3086_v20, %v1642_v39  ;;  %v1694_v42 = vmax.f32 %v1640_v37, 0.0 }
 0x300   : > { %v1697_v41 = vmax.f32 %v1651_v38, 0.0 }
 0x301   : > { %v1695_v43 = vmax.f32 %v1643_v50, 0.0 }
 0x302   : > { %v1715_v51 = vpack.c.bf16 %v1697_v41, %v1696_v40 }
 0x303   : > { %v1714_v44 = vpack.c.bf16 %v1695_v43, %v1694_v42  ;;  %v2446_v54 = vpop.f32.mrb[76].mxu1 }
 0x304   : > { %v1664_v56 = vadd.f32 %v2446_v54, %v3086_v20  ;;  %v1655_v52 = vpop.f32.mrb[77].mxu1 }
 0x305   : > { %v1656_v57 = vadd.f32 %v3086_v20, %v1655_v52  ;;  %v2447_v59 = vpop.f32.mrb[78].mxu1  ;;  %2488 = vmatprep.mubr.bf16.mxu0 %v1714_v44 }
 0x306   : > { %v1667_v60 = vadd.f32 %v2447_v59, %v3086_v20  ;;  %v1658_v62 = vpop.f32.mrb[79].mxu1  ;;  %2489 = vmatmul.mubr.bf16.gmra.mrb[56].mxu0 %v1715_v51  ;;  %v1700_v55 = vmax.f32 %v1664_v56, 0.0 }
 0x307   : > { %v1659_v63 = vadd.f32 %v3086_v20, %v1658_v62  ;;  %v1698_v2 = vmax.f32 %v1656_v57, 0.0 }
 0x308   : > { %v1701_v1 = vmax.f32 %v1667_v60, 0.0 }
 0x309   : > { %v1699_v58 = vmax.f32 %v1659_v63, 0.0 }
 0x30a   : > { %v1717_v3 = vpack.c.bf16 %v1701_v1, %v1700_v55 }
 0x30b   : > { %v1716_v4 = vpack.c.bf16 %v1699_v58, %v1698_v2 }
 0x30d   : > { %2492 = vmatprep.mubr.bf16.mxu0 %v1716_v4 }
 0x30e   : > { %2493 = vmatmul.mubr.bf16.gmra.mrb[60].mxu0 %v1717_v3 }
 0x3a7   : > { %v2466_v6 = vpop.f32.mrb[32].mxu0 }
 0x3a8   : > { %v1832_v61 = vadd.f32 %v2466_v6, %v3126_v5  ;;  %v1823_v20 = vpop.f32.mrb[33].mxu0 }
 0x3a9   : > { %v1824_v7 = vadd.f32 %v3126_v5, %v1823_v20  ;;  %v2467_v8 = vpop.f32.mrb[34].mxu0 }
 0x3aa   : > { %1952 = vst [vmem:[%s3130_s13 + $0x10] sm:$0xff] %v1832_v61  ;;  %v1835_v10 = vadd.f32 %v2467_v8, %v3126_v5  ;;  %v1826_v0 = vpop.f32.mrb[35].mxu0 }
 0x3ab   : > { %1950 = vst [vmem:[%s3130_s13] sm:$0xff] %v1824_v7  ;;  %v1827_v11 = vadd.f32 %v3126_v5, %v1826_v0 }
 0x3ac   : > { %1953 = vst [vmem:[%s3130_s13 + $0x18] sm:$0xff] %v1835_v10 }
 0x3ad   : > { %1951 = vst [vmem:[%s3130_s13 + $0x8] sm:$0xff] %v1827_v11 }
 0x3af   : > { %v2470_v13 = vpop.f32.mrb[36].mxu0 }
 0x3b0   : > { %v1848_v14 = vadd.f32 %v2470_v13, %v3126_v5  ;;  %v1839_v15 = vpop.f32.mrb[37].mxu0 }
 0x3b1   : > { %v1840_v17 = vadd.f32 %v3126_v5, %v1839_v15  ;;  %v2471_v9 = vpop.f32.mrb[38].mxu0 }
 0x3b2   : > { %1956 = vst [vmem:[%s3130_s13 + $0x30] sm:$0xff] %v1848_v14  ;;  %v1851_v18 = vadd.f32 %v2471_v9, %v3126_v5  ;;  %v1842_v27 = vpop.f32.mrb[39].mxu0 }
 0x3b3   : > { %1954 = vst [vmem:[%s3130_s13 + $0x20] sm:$0xff] %v1840_v17  ;;  %v1843_v12 = vadd.f32 %v3126_v5, %v1842_v27 }
 0x3b4   : > { %1957 = vst [vmem:[%s3130_s13 + $0x38] sm:$0xff] %v1851_v18 }
 0x3b5   : > { %1955 = vst [vmem:[%s3130_s13 + $0x28] sm:$0xff] %v1843_v12 }
 0x3b7   : > { %v2474_v21 = vpop.f32.mrb[40].mxu0 }
 0x3b8   : > { %v1864_v22 = vadd.f32 %v2474_v21, %v3126_v5  ;;  %v1855_v23 = vpop.f32.mrb[41].mxu0 }
 0x3b9   : > { %v1856_v16 = vadd.f32 %v3126_v5, %v1855_v23  ;;  %v2475_v19 = vpop.f32.mrb[42].mxu0 }
 0x3ba   : > { %1960 = vst [vmem:[%s3130_s13 + $0x50] sm:$0xff] %v1864_v22  ;;  %v1867_v53 = vadd.f32 %v2475_v19, %v3126_v5  ;;  %v1858_v45 = vpop.f32.mrb[43].mxu0 }
 0x3bb   : > { %1958 = vst [vmem:[%s3130_s13 + $0x40] sm:$0xff] %v1856_v16  ;;  %v1859_v24 = vadd.f32 %v3126_v5, %v1858_v45 }
 0x3bc   : > { %1961 = vst [vmem:[%s3130_s13 + $0x58] sm:$0xff] %v1867_v53 }
 0x3bd   : > { %1959 = vst [vmem:[%s3130_s13 + $0x48] sm:$0xff] %v1859_v24 }
 0x3bf   : > { %v2478_v25 = vpop.f32.mrb[44].mxu0 }
 0x3c0   : > { %v1880_v46 = vadd.f32 %v2478_v25, %v3126_v5  ;;  %v1871_v26 = vpop.f32.mrb[45].mxu0 }
 0x3c1   : > { %v1872_v28 = vadd.f32 %v3126_v5, %v1871_v26  ;;  %v2479_v29 = vpop.f32.mrb[46].mxu0 }
 0x3c2   : > { %1964 = vst [vmem:[%s3130_s13 + $0x70] sm:$0xff] %v1880_v46  ;;  %v1883_v47 = vadd.f32 %v2479_v29, %v3126_v5  ;;  %v1874_v30 = vpop.f32.mrb[47].mxu0 }
 0x3c3   : > { %1962 = vst [vmem:[%s3130_s13 + $0x60] sm:$0xff] %v1872_v28  ;;  %v1875_v31 = vadd.f32 %v3126_v5, %v1874_v30 }
 0x3c4   : > { %1965 = vst [vmem:[%s3130_s13 + $0x78] sm:$0xff] %v1883_v47 }
 0x3c5   : > { %1963 = vst [vmem:[%s3130_s13 + $0x68] sm:$0xff] %v1875_v31 }
 0x3c9   : > { %v2482_v32 = vpop.f32.mrb[48].mxu0 }
 0x3ca   : > { %v1896_v48 = vadd.f32 %v2482_v32, %v3126_v5  ;;  %v1887_v33 = vpop.f32.mrb[49].mxu0 }
 0x3cb   : > { %v1888_v34 = vadd.f32 %v3126_v5, %v1887_v33  ;;  %v2483_v35 = vpop.f32.mrb[50].mxu0 }
 0x3cc   : > { %1968 = vst [vmem:[%s3130_s13 + $0x90] sm:$0xff] %v1896_v48  ;;  %v1899_v36 = vadd.f32 %v2483_v35, %v3126_v5  ;;  %v1890_v37 = vpop.f32.mrb[51].mxu0 }
 0x3cd   : > { %1966 = vst [vmem:[%s3130_s13 + $0x80] sm:$0xff] %v1888_v34  ;;  %v1891_v49 = vadd.f32 %v3126_v5, %v1890_v37 }
 0x3ce   : > { %1969 = vst [vmem:[%s3130_s13 + $0x98] sm:$0xff] %v1899_v36 }
 0x3cf   : > { %1967 = vst [vmem:[%s3130_s13 + $0x88] sm:$0xff] %v1891_v49 }
 0x3d1   : > { %v2486_v38 = vpop.f32.mrb[52].mxu0 }
 0x3d2   : > { %v1912_v39 = vadd.f32 %v2486_v38, %v3126_v5  ;;  %v1903_v50 = vpop.f32.mrb[53].mxu0 }
 0x3d3   : > { %v1904_v40 = vadd.f32 %v3126_v5, %v1903_v50  ;;  %v2487_v41 = vpop.f32.mrb[54].mxu0 }
 0x3d4   : > { %1972 = vst [vmem:[%s3130_s13 + $0xb0] sm:$0xff] %v1912_v39  ;;  %v1915_v42 = vadd.f32 %v2487_v41, %v3126_v5  ;;  %v1906_v43 = vpop.f32.mrb[55].mxu0 }
 0x3d5   : > { %1970 = vst [vmem:[%s3130_s13 + $0xa0] sm:$0xff] %v1904_v40  ;;  %v1907_v51 = vadd.f32 %v3126_v5, %v1906_v43 }
 0x3d6   : > { %1973 = vst [vmem:[%s3130_s13 + $0xb8] sm:$0xff] %v1915_v42 }
 0x3d7   : > { %1971 = vst [vmem:[%s3130_s13 + $0xa8] sm:$0xff] %v1907_v51 }
 0x3d9   : > { %v2490_v44 = vpop.f32.mrb[56].mxu0 }
 0x3da   : > { %v1928_v54 = vadd.f32 %v2490_v44, %v3126_v5  ;;  %v1919_v56 = vpop.f32.mrb[57].mxu0 }
 0x3db   : > { %v1920_v52 = vadd.f32 %v3126_v5, %v1919_v56  ;;  %v2491_v57 = vpop.f32.mrb[58].mxu0 }
 0x3dc   : > { %1976 = vst [vmem:[%s3130_s13 + $0xd0] sm:$0xff] %v1928_v54  ;;  %v1931_v59 = vadd.f32 %v2491_v57, %v3126_v5  ;;  %v1922_v60 = vpop.f32.mrb[59].mxu0 }
 0x3dd   : > { %1974 = vst [vmem:[%s3130_s13 + $0xc0] sm:$0xff] %v1920_v52  ;;  %v1923_v62 = vadd.f32 %v3126_v5, %v1922_v60 }
 0x3de   : > { %1977 = vst [vmem:[%s3130_s13 + $0xd8] sm:$0xff] %v1931_v59 }
 0x3df   : > { %1975 = vst [vmem:[%s3130_s13 + $0xc8] sm:$0xff] %v1923_v62 }
 0x3e1   : > { %v2494_v63 = vpop.f32.mrb[60].mxu0 }
 0x3e2   : > { %v1944_v55 = vadd.f32 %v2494_v63, %v3126_v5  ;;  %v1935_v1 = vpop.f32.mrb[61].mxu0 }
 0x3e3   : > { %v1936_v2 = vadd.f32 %v3126_v5, %v1935_v1  ;;  %v2495_v58 = vpop.f32.mrb[62].mxu0 }
 0x3e4   : > { %1980 = vst [vmem:[%s3130_s13 + $0xf0] sm:$0xff] %v1944_v55  ;;  %v1947_v3 = vadd.f32 %v2495_v58, %v3126_v5  ;;  %v1938_v4 = vpop.f32.mrb[63].mxu0 }
 0x3e5   : > { %1978 = vst [vmem:[%s3130_s13 + $0xe0] sm:$0xff] %v1936_v2  ;;  %v1939_v6 = vadd.f32 %v3126_v5, %v1938_v4 }
 0x3e6   : > { %1981 = vst [vmem:[%s3130_s13 + $0xf8] sm:$0xff] %v1947_v3 }
 0x3e7   : > { %1979 = vst [vmem:[%s3130_s13 + $0xe8] sm:$0xff] %v1939_v6 }
 0x3e8   : > { %2644 = shalt.err (!%p2641_p3)
}
 0x3e9   : > { %s2645_s22 = scalar_lea.hbm %s3195_s16, 4096  ;;  %s2649_s29 = scalar_lea.hbm %s3257_s11, 8192 }
 0x3ea   : > { %p2646_p4 = scmp.ne.s32.totalorder %s3195_s16, %s2645_s22  ;;  %p2650_p9 = scmp.lt.u32.totalorder %s3195_s16, %s3257_s11 }
 0x3eb   : > { %p2651_p10 = scmp.lt.u32.totalorder %s2649_s29, %s2645_s22  ;;  %p2653_p12 = scmp.lt.u32.totalorder %s2645_s22, %s3195_s16 }
 0x3ec   : > { %p2647_p7 = pnand %p2646_p4, %p2796_p5 }
 0x3ed   : > { %p2652_p11 = por %p2651_p10, %p2650_p9 }
 0x3ee   : > { %p2648_p8 = pneg %p2647_p7 }
 0x3ef   : > { %p2654_p13 = por %p2653_p12, %p2652_p11 }
 0x3f1   : > { %p2655_p0 = pnand %p2654_p13, %p2648_p8 }
 0x3f3   : > { %2658 = shalt.err (!%p2655_p0)
}
 0x3f4   : > { %s2696_s24 = smov 128   ;;  %s2697_s12 = smov 8  }
 0x3f5   : > { %2533 = dma.vmem_to_hbm [thread:$0]  (%p2796_p5), %s3197_s14, 4096, %s3195_s16, %s3205_s21, %s2696_s24, %s2696_s24, %s2697_s12  }
 0x3f6 PF: > { %p2539_p1 = scmp.ge.s32.totalorder %s2693_s20, 2  ;;  %s2011_s13 = sand.u32 1, %s2681_s17  }
 0x3f7   : > { %s2012_s22 = scalar_lea.sflag [#allocation3], %s2011_s13 }
 0x3f8   : > { %p2536_p2 = pnand %p2539_p1, %p2800_p6 }
 0x3fa   : > { %2676 = dma.done.wait (!%p2536_p2), %s2012_s22, 4096  }
 0x3fb   : > { %2678 = vsyncadd (!%p2536_p2), %s2012_s22, 4294963200  ;;  %p21_p3 = scmp.ge.s32.totalorder %s2783_s23, 4   ;;  %s3260_s17 = smov %s2685_s18 }
 0x3fc   : > { %s3261_s18 = smov %s2689_s19  ;;  %s3262_s19 = smov %s2794_s26 }
 0x3fd   : > { %s3263_s20 = smov %s2783_s23  ;;  %23 = sbr.rel (!%p21_p3) target bundleno = 3 (0x3), region = 102 }
 0x404   :  { %2017 = vsyncpa [#allocation3], 1 }
 0x405   :  { %2019 = vsyncpa [#allocation3 + $0x1], 1 }

</bundles_post_ra>
